<compile_context>
chip_gen: v6e
topology: v6e:2x2x1
jax: 0.10.0
libtpu: 0.0.40
codegen_flags: <defaults>
</compile_context>

<pallas_src>
import jax
import jax.numpy as jnp
from jax.experimental import pallas as pl
from jax.experimental.pallas import tpu as pltpu


# ------------------------------ Pallas kernel ------------------------------ #

def attention_kernel(x_ref, w1t_ref, b1_ref, w2_ref, b2_ref, m_ref, cb_ref,
                     out_ref):
    x = x_ref[0]                                       # (C, HW) f32, lane-dense

    # ---- ChannelAttention ------------------------------------------------- #
    # NOTE: the PyTorch module's "max_pooling" is ALSO AdaptiveAvgPool2d, so
    # both MLP branches are identical -> branch + branch.
    pooled = jnp.mean(x, axis=1, keepdims=True)        # (C, 1)  == AdaptiveAvgPool2d(1)
    # Tiny MLP ((C->mid->C), mid=2) on the VPU: broadcast-mul + reduce, no MXU.
    h = jnp.sum(pooled * w1t_ref[...], axis=0, keepdims=True) + b1_ref[...]   # (1, mid)
    h = jnp.maximum(h, 0.0)                            # ReLU
    branch = jnp.sum(w2_ref[...] * h, axis=1, keepdims=True) + b2_ref[...]    # (C, 1)
    ca = jax.nn.sigmoid(branch + branch)               # (C, 1)

    # ---- SpatialAttention -------------------------------------------------- #
    avg_c = jnp.mean(x, axis=0, keepdims=True)         # (1, HW) channel mean
    max_c = jnp.max(x, axis=0, keepdims=True)          # (1, HW) channel max
    # 7x7 "same" conv over [mean, max] as one precomputed linear operator per
    # input channel: y_flat = avg_flat @ M0 + max_flat @ M1 + bias.
    y = (jnp.dot(avg_c, m_ref[0], preferred_element_type=jnp.float32)
         + jnp.dot(max_c, m_ref[1], preferred_element_type=jnp.float32)
         + cb_ref[...])                                # (1, HW)
    sa = jax.nn.sigmoid(y) * y                         # (1, HW)

    # ---- Broadcast combine: (B,C,1,1) + (B,1,H,W), lane-dense store -------- #
    out_ref[0] = ca + sa                               # (C, HW)


# ------------------- Host-side conv-operator construction ------------------ #

def build_conv_operator(conv_w, H, W):
    """Turn the (1, 2, 7, 7) 'same'-padded conv into two (HW, HW) matrices.

    y[o] = sum_i avg[i] * M[0, i, o] + sum_i max[i] * M[1, i, o]
    with zero padding implicit (invalid taps are zeroed).
    """
    HW = H * W
    K = conv_w.shape[-1]
    pad = K // 2
    idx = jnp.arange(HW)
    row_i = (idx // W)[:, None]          # input pixel row   (HW, 1)
    col_i = (idx % W)[:, None]           # input pixel col
    row_o = (idx // W)[None, :]          # output pixel row  (1, HW)
    col_o = (idx % W)[None, :]
    ky = row_i - row_o + pad             # (HW, HW)
    kx = col_i - col_o + pad
    valid = (ky >= 0) & (ky < K) & (kx >= 0) & (kx < K)
    kyc = jnp.clip(ky, 0, K - 1)
    kxc = jnp.clip(kx, 0, K - 1)
    m0 = jnp.where(valid, conv_w[0, 0][kyc, kxc], 0.0)   # conv in-ch 0 = mean
    m1 = jnp.where(valid, conv_w[0, 1][kyc, kxc], 0.0)   # conv in-ch 1 = max
    return jnp.stack([m0, m1], axis=0).astype(jnp.float32)   # (2, HW, HW)


# ------------------------------ Host wrapper ------------------------------- #

def attention_forward(x, params):
    B, C, H, W = x.shape
    mid = params["w1"].shape[0]
    HW = H * W

    x_flat = x.reshape(B, C, HW)                    # free view (no transpose)
    w1t = params["w1"].T                            # (C, mid)
    b1 = params["b1"].reshape(1, mid)
    w2 = params["w2"]                               # (C, mid)
    b2 = params["b2"].reshape(C, 1)
    m = build_conv_operator(params["conv_w"], H, W) # (2, HW, HW)
    cb = params["conv_b"].reshape(1, 1)

    out = pl.pallas_call(
        attention_kernel,
        out_shape=jax.ShapeDtypeStruct((B, C, HW), jnp.float32),
        grid=(B,),
        in_specs=[
            pl.BlockSpec((1, C, HW), lambda b: (b, 0, 0)),     # x
            pl.BlockSpec((C, mid), lambda b: (0, 0)),          # w1^T
            pl.BlockSpec((1, mid), lambda b: (0, 0)),          # b1
            pl.BlockSpec((C, mid), lambda b: (0, 0)),          # w2
            pl.BlockSpec((C, 1), lambda b: (0, 0)),            # b2
            pl.BlockSpec((2, HW, HW), lambda b: (0, 0, 0)),    # conv operator
            pl.BlockSpec((1, 1), lambda b: (0, 0)),            # conv bias
        ],
        out_specs=pl.BlockSpec((1, C, HW), lambda b: (b, 0, 0)),
        compiler_params=pltpu.CompilerParams(
            dimension_semantics=("parallel",)),
    )(x_flat, w1t, b1, w2, b2, m, cb)
    return out.reshape(B, C, H, W)


# ------------------------- Pure-JAX reference check ------------------------ #

def attention_ref(x, p):
    pooled = jnp.mean(x, axis=(2, 3))                           # (B, C)

    def mlp(v):
        h = jnp.maximum(jnp.dot(v, p["w1"].T, precision="highest") + p["b1"], 0.0)
        return jnp.dot(h, p["w2"].T, precision="highest") + p["b2"]

    ca = jax.nn.sigmoid(mlp(pooled) + mlp(pooled))              # (B, C)

    avg_c = jnp.mean(x, axis=1, keepdims=True)
    max_c = jnp.max(x, axis=1, keepdims=True)
    cat = jnp.concatenate([avg_c, max_c], axis=1)               # (B, 2, H, W)
    y = jax.lax.conv_general_dilated(
        cat, p["conv_w"], (1, 1), ((3, 3), (3, 3)),
        dimension_numbers=("NCHW", "OIHW", "NCHW"),
        precision=jax.lax.Precision.HIGHEST,
    ) + p["conv_b"][None, :, None, None]                        # (B, 1, H, W)
    sa = jax.nn.sigmoid(y) * y
    return ca[:, :, None, None] + sa                            # (B, C, H, W)


# ---------------------------------- Main ----------------------------------- #

if __name__ == "__main__":
    B, C, H, W = 2, 32, 16, 16          # in_channels=32, reduction=16 -> mid=2
    mid = C // 16

    key = jax.random.PRNGKey(0)
    ks = jax.random.split(key, 7)
    x = jax.random.normal(ks[0], (B, C, H, W), jnp.float32)
    params = {
        "w1": jax.random.normal(ks[1], (mid, C), jnp.float32) * 0.2,
        "b1": jax.random.normal(ks[2], (mid,), jnp.float32) * 0.1,
        "w2": jax.random.normal(ks[3], (C, mid), jnp.float32) * 0.2,
        "b2": jax.random.normal(ks[4], (C,), jnp.float32) * 0.1,
        "conv_w": jax.random.normal(ks[5], (1, 2, 7, 7), jnp.float32) * 0.1,
        "conv_b": jax.random.normal(ks[6], (1,), jnp.float32) * 0.1,
    }

    out = attention_forward(x, params)
    out = jax.block_until_ready(out)

    ref = jax.block_until_ready(attention_ref(x, params))
    assert out.shape == (B, C, H, W)
    assert jnp.allclose(out, ref, rtol=1e-3, atol=1e-3), (
        f"max abs err = {jnp.max(jnp.abs(out - ref))}")

    print("KERNEL_OK")
</pallas_src>

<mosaic_0001>
module attributes {stable_mosaic.version = 11 : i64} {
  func.func @attention_kernel(%arg0: i32, %arg1: memref<1x32x256xf32, #tpu.memory_space<vmem>>, %arg2: memref<32x2xf32, #tpu.memory_space<vmem>>, %arg3: memref<1x2xf32, #tpu.memory_space<vmem>>, %arg4: memref<32x2xf32, #tpu.memory_space<vmem>>, %arg5: memref<32x1xf32, #tpu.memory_space<vmem>>, %arg6: memref<2x256x256xf32, #tpu.memory_space<vmem>>, %arg7: memref<1x1xf32, #tpu.memory_space<vmem>>, %arg8: memref<1x32x256xf32, #tpu.memory_space<vmem>>) attributes {dimension_semantics = [#tpu.dimension_semantics<parallel>], iteration_bounds = array<i64: 2>, scalar_prefetch = 0 : i64, scratch_operands = 0 : i64, tpu.core_type = #tpu.core_type<tc>, window_params = [{transform_indices = @transform_0, window_bounds = array<i64: 1, 32, 256>}, {pipeline_mode = #tpu.pipeline_mode<synchronous>, transform_indices = @transform_1, window_bounds = array<i64: 32, 2>}, {pipeline_mode = #tpu.pipeline_mode<synchronous>, transform_indices = @transform_2, window_bounds = array<i64: 1, 2>}, {pipeline_mode = #tpu.pipeline_mode<synchronous>, transform_indices = @transform_3, window_bounds = array<i64: 32, 2>}, {pipeline_mode = #tpu.pipeline_mode<synchronous>, transform_indices = @transform_4, window_bounds = array<i64: 32, 1>}, {pipeline_mode = #tpu.pipeline_mode<synchronous>, transform_indices = @transform_5, window_bounds = array<i64: 2, 256, 256>}, {pipeline_mode = #tpu.pipeline_mode<synchronous>, transform_indices = @transform_6, window_bounds = array<i64: 1, 1>}, {transform_indices = @transform_7, window_bounds = array<i64: 1, 32, 256>}]} {
    %c0 = arith.constant 0 : index
    %c0_0 = arith.constant 0 : index
    %c0_1 = arith.constant 0 : index
    %0 = vector.load %arg1[%c0, %c0_0, %c0_1] : memref<1x32x256xf32, #tpu.memory_space<vmem>>, vector<1x32x256xf32>
    %1 = vector.shape_cast %0 : vector<1x32x256xf32> to vector<32x256xf32>
    %cst = arith.constant dense<0.000000e+00> : vector<32xf32>
    %2 = vector.multi_reduction <add>, %1, %cst [1] : vector<32x256xf32> to vector<32xf32>
    %3 = vector.shape_cast %2 : vector<32xf32> to vector<32x1xf32>
    %cst_2 = arith.constant 2.560000e+02 : f32
    %4 = vector.broadcast %cst_2 : f32 to vector<32x1xf32>
    %5 = arith.divf %3, %4 : vector<32x1xf32>
    %c0_3 = arith.constant 0 : index
    %c0_4 = arith.constant 0 : index
    %6 = vector.load %arg2[%c0_3, %c0_4] : memref<32x2xf32, #tpu.memory_space<vmem>>, vector<32x2xf32>
    %7 = vector.broadcast %5 : vector<32x1xf32> to vector<32x2xf32>
    %8 = arith.mulf %7, %6 : vector<32x2xf32>
    %cst_5 = arith.constant dense<0.000000e+00> : vector<2xf32>
    %9 = vector.multi_reduction <add>, %8, %cst_5 [0] : vector<32x2xf32> to vector<2xf32>
    %10 = vector.shape_cast %9 : vector<2xf32> to vector<1x2xf32>
    %c0_6 = arith.constant 0 : index
    %c0_7 = arith.constant 0 : index
    %11 = vector.load %arg3[%c0_6, %c0_7] : memref<1x2xf32, #tpu.memory_space<vmem>>, vector<1x2xf32>
    %12 = arith.addf %10, %11 : vector<1x2xf32>
    %cst_8 = arith.constant 0.000000e+00 : f32
    %13 = vector.broadcast %cst_8 : f32 to vector<1x2xf32>
    %14 = arith.maximumf %12, %13 : vector<1x2xf32>
    %c0_9 = arith.constant 0 : index
    %c0_10 = arith.constant 0 : index
    %15 = vector.load %arg4[%c0_9, %c0_10] : memref<32x2xf32, #tpu.memory_space<vmem>>, vector<32x2xf32>
    %16 = vector.broadcast %14 : vector<1x2xf32> to vector<32x2xf32>
    %17 = arith.mulf %15, %16 : vector<32x2xf32>
    %cst_11 = arith.constant dense<0.000000e+00> : vector<32xf32>
    %18 = vector.multi_reduction <add>, %17, %cst_11 [1] : vector<32x2xf32> to vector<32xf32>
    %19 = vector.shape_cast %18 : vector<32xf32> to vector<32x1xf32>
    %c0_12 = arith.constant 0 : index
    %c0_13 = arith.constant 0 : index
    %20 = vector.load %arg5[%c0_12, %c0_13] : memref<32x1xf32, #tpu.memory_space<vmem>>, vector<32x1xf32>
    %21 = arith.addf %19, %20 : vector<32x1xf32>
    %22 = arith.addf %21, %21 : vector<32x1xf32>
    %23 = arith.negf %22 : vector<32x1xf32>
    %24 = math.exp %23 : vector<32x1xf32>
    %cst_14 = arith.constant 1.000000e+00 : f32
    %25 = vector.broadcast %cst_14 : f32 to vector<32x1xf32>
    %26 = arith.addf %25, %24 : vector<32x1xf32>
    %27 = arith.divf %25, %26 : vector<32x1xf32>
    %cst_15 = arith.constant dense<0.000000e+00> : vector<256xf32>
    %28 = vector.multi_reduction <add>, %1, %cst_15 [0] : vector<32x256xf32> to vector<256xf32>
    %29 = vector.shape_cast %28 : vector<256xf32> to vector<1x256xf32>
    %cst_16 = arith.constant 3.200000e+01 : f32
    %30 = vector.broadcast %cst_16 : f32 to vector<1x256xf32>
    %31 = arith.divf %29, %30 : vector<1x256xf32>
    %cst_17 = arith.constant dense<0xFF800000> : vector<256xf32>
    %32 = vector.multi_reduction <maximumf>, %1, %cst_17 [0] : vector<32x256xf32> to vector<256xf32>
    %33 = vector.shape_cast %32 : vector<256xf32> to vector<1x256xf32>
    %c0_18 = arith.constant 0 : index
    %c0_19 = arith.constant 0 : index
    %c0_20 = arith.constant 0 : index
    %34 = vector.load %arg6[%c0_18, %c0_19, %c0_20] : memref<2x256x256xf32, #tpu.memory_space<vmem>>, vector<1x256x256xf32>
    %35 = vector.shape_cast %34 : vector<1x256x256xf32> to vector<256x256xf32>
    %cst_21 = arith.constant dense<0.000000e+00> : vector<1x256xf32>
    %36 = tpu.matmul %31, %35, %cst_21 {dimension_numbers = #tpu.dot_dimension_numbers<[1], [0], [0], [1], [0, 0, 1, 1], [], []>} : vector<1x256xf32>, vector<256x256xf32>, vector<1x256xf32> -> vector<1x256xf32>
    %c1 = arith.constant 1 : index
    %c0_22 = arith.constant 0 : index
    %c0_23 = arith.constant 0 : index
    %37 = vector.load %arg6[%c1, %c0_22, %c0_23] : memref<2x256x256xf32, #tpu.memory_space<vmem>>, vector<1x256x256xf32>
    %38 = vector.shape_cast %37 : vector<1x256x256xf32> to vector<256x256xf32>
    %cst_24 = arith.constant dense<0.000000e+00> : vector<1x256xf32>
    %39 = tpu.matmul %33, %38, %cst_24 {dimension_numbers = #tpu.dot_dimension_numbers<[1], [0], [0], [1], [0, 0, 1, 1], [], []>} : vector<1x256xf32>, vector<256x256xf32>, vector<1x256xf32> -> vector<1x256xf32>
    %40 = arith.addf %36, %39 : vector<1x256xf32>
    %c0_25 = arith.constant 0 : index
    %c0_26 = arith.constant 0 : index
    %41 = vector.load %arg7[%c0_25, %c0_26] : memref<1x1xf32, #tpu.memory_space<vmem>>, vector<1x1xf32>
    %42 = vector.broadcast %41 : vector<1x1xf32> to vector<1x256xf32>
    %43 = arith.addf %40, %42 : vector<1x256xf32>
    %44 = arith.negf %43 : vector<1x256xf32>
    %45 = math.exp %44 : vector<1x256xf32>
    %cst_27 = arith.constant 1.000000e+00 : f32
    %46 = vector.broadcast %cst_27 : f32 to vector<1x256xf32>
    %47 = arith.addf %46, %45 : vector<1x256xf32>
    %48 = arith.divf %46, %47 : vector<1x256xf32>
    %49 = arith.mulf %48, %43 : vector<1x256xf32>
    %50 = vector.broadcast %27 : vector<32x1xf32> to vector<32x256xf32>
    %51 = vector.broadcast %49 : vector<1x256xf32> to vector<32x256xf32>
    %52 = arith.addf %50, %51 : vector<32x256xf32>
    %c0_28 = arith.constant 0 : index
    %c0_29 = arith.constant 0 : index
    %c0_30 = arith.constant 0 : index
    %53 = vector.load %arg8[%c0_28, %c0_29, %c0_30] : memref<1x32x256xf32, #tpu.memory_space<vmem>>, vector<1x32x256xf32>
    %54 = vector.shape_cast %53 : vector<1x32x256xf32> to vector<32x256xf32>
    %55 = vector.shape_cast %52 : vector<32x256xf32> to vector<1x32x256xf32>
    tpu.vector_store %arg8[%c0_28, %c0_29, %c0_30], %55 {strides = array<i32>} : memref<1x32x256xf32, #tpu.memory_space<vmem>>, vector<1x32x256xf32>,
    return
  }
  func.func @transform_0(%arg0: i32) -> (i32, i32, i32) {
    %c0_i32 = arith.constant 0 : i32
    %c0_i32_0 = arith.constant 0 : i32
    %c0_i32_1 = arith.constant 0 : i32
    return %arg0, %c0_i32, %c0_i32_0 : i32, i32, i32
  }
  func.func @transform_1(%arg0: i32) -> (i32, i32) {
    %c0_i32 = arith.constant 0 : i32
    %c0_i32_0 = arith.constant 0 : i32
    %c0_i32_1 = arith.constant 0 : i32
    return %c0_i32, %c0_i32_0 : i32, i32
  }
  func.func @transform_2(%arg0: i32) -> (i32, i32) {
    %c0_i32 = arith.constant 0 : i32
    %c0_i32_0 = arith.constant 0 : i32
    %c0_i32_1 = arith.constant 0 : i32
    return %c0_i32, %c0_i32_0 : i32, i32
  }
  func.func @transform_3(%arg0: i32) -> (i32, i32) {
    %c0_i32 = arith.constant 0 : i32
    %c0_i32_0 = arith.constant 0 : i32
    %c0_i32_1 = arith.constant 0 : i32
    return %c0_i32, %c0_i32_0 : i32, i32
  }
  func.func @transform_4(%arg0: i32) -> (i32, i32) {
    %c0_i32 = arith.constant 0 : i32
    %c0_i32_0 = arith.constant 0 : i32
    %c0_i32_1 = arith.constant 0 : i32
    return %c0_i32, %c0_i32_0 : i32, i32
  }
  func.func @transform_5(%arg0: i32) -> (i32, i32, i32) {
    %c0_i32 = arith.constant 0 : i32
    %c0_i32_0 = arith.constant 0 : i32
    %c0_i32_1 = arith.constant 0 : i32
    %c0_i32_2 = arith.constant 0 : i32
    return %c0_i32, %c0_i32_0, %c0_i32_1 : i32, i32, i32
  }
  func.func @transform_6(%arg0: i32) -> (i32, i32) {
    %c0_i32 = arith.constant 0 : i32
    %c0_i32_0 = arith.constant 0 : i32
    %c0_i32_1 = arith.constant 0 : i32
    return %c0_i32, %c0_i32_0 : i32, i32
  }
  func.func @transform_7(%arg0: i32) -> (i32, i32, i32) {
    %c0_i32 = arith.constant 0 : i32
    %c0_i32_0 = arith.constant 0 : i32
    %c0_i32_1 = arith.constant 0 : i32
    return %arg0, %c0_i32, %c0_i32_0 : i32, i32, i32
  }
}

</mosaic_0001>

<bundles_post_ra>
// kernel: tpu_custom_call.1
= control target key start
LH: loop header
LB: loop body
LE: loop exit
PB: predicated region body
PF: predicated region fallthrough
CT: control target
= control target key end

     0   :  { %s1470_s0 = inlined_call_operand.hbm [shape: f32[2,32,256], index: 0, kind: input, shape index: {}]   ;;  %s1471_s1 = inlined_call_operand.vmem [shape: f32[32,2], index: 1, kind: input, shape index: {}]   ;;  %s1472_s2 = inlined_call_operand.vmem [shape: f32[1,2], index: 2, kind: input, shape index: {}]   ;;  %s1473_s3 = inlined_call_operand.vmem [shape: f32[32,2], index: 3, kind: input, shape index: {}]   ;;  %s1474_s4 = inlined_call_operand.vmem [shape: f32[32,1], index: 4, kind: input, shape index: {}]   ;;  %s1475_s5 = inlined_call_operand.hbm [shape: f32[2,256,256], index: 5, kind: input, shape index: {}]   ;;  %s1476_s6 = inlined_call_operand.<no memory space> [shape: f32[1,1], index: 6, kind: input, shape index: {}]   ;;  %s1477_s7 = inlined_call_operand.hbm [shape: f32[2,32,256], index: 7, kind: output, shape index: {}]  }
   0x1   :  { %v12_v0 = vstv %s1476_s6 }
   0x2   :  { %13 = vst [vmem:[#allocation2] sm:$0x1] %v12_v0 }
   0x3   :  { %14 = vsyncpa [#allocation4], 0 }
   0x4   :  { %16 = vsyncpa [#allocation4 + $0x1], 0 }
   0x5   :  { %17 = vsyncpa [#allocation7], 0 }
   0x6   :  { %18 = vsyncpa [#allocation5], 0 }
   0x7   :  { %20 = vsyncpa [#allocation5 + $0x1], 0  ;;  %s1188_s26 = smov 0   ;;  %s1190_s27 = smov 0  }
   0x8   :  { %s1192_s28 = smov 0   ;;  %s1194_s29 = smov 0  }
   0x9 LB: > { %s1209_s6 = sadd.s32 4294967295, %s1135_s29   ;;  %s901_s30 = sadd.s32 4294967294, %s1135_s29   ;;  %s1135_s29 = sphi %s1194_s29, %s1503_s29   ;;  %s1131_s28 = sphi %s1192_s28, %s1502_s28   ;;  %s1127_s27 = sphi %s1190_s27, %s1501_s27   ;;  %s1123_s26 = sphi %s1188_s26, %s1500_s26  }
   0xa   : > { %p46_p0 = scmp.ne.s32.totalorder %s1127_s27, %s1123_s26  ;;  %p1478_p1 = scmp.eq.s32.totalorder %s1209_s6, 0 }
   0xb   : > { %p202_p3 = scmp.eq.s32.totalorder %s901_s30, 1  ;;  %p902_p5 = scmp.ge.s32.totalorder %s1135_s29, 1 }
   0xc   : > { %p1218_p4 = por %p1478_p1, %p46_p0  ;;  %p209_p7 = scmp.lt.s32.totalorder %s1135_s29, 3 }
   0xd   : > { %p1223_p6 = por %p202_p3, %p46_p0  ;;  %s1137_s11 = smov [#allocation6]  }
   0xe   : > { %s1484_s8 = scalar_select %p1218_p4, 1, 0 }
   0xf   : > { %s1485_s9 = scalar_select %p1223_p6, 1, 0 }
  0x10   : > { %p1228_p8 = pnand %p902_p5, %p209_p7  ;;  %s233_s12 = sshll.u32 %s1137_s11, 4  ;;  %s234_s12 = int_to_ptr.vmem [resolvable:$true] %s233_s12 }
  0x11   : > { %s1242_s14 = sadd.s32 1, %s1135_s29   ;;  %s33_s15 = sadd.s32 1, %s1131_s28 }
  0x12   : > { %s1486_s10 = scalar_select %p1228_p8, 1, 0 }
  0x13   : > { %p933_p9 = pneg %p1228_p8  ;;  %s30_s16 = ssub.s32 %s1135_s29, %s1242_s14 }
  0x14   : > { %s1024_s17 = scalar_lea.vmem %s234_s12, 16384  ;;  %p1032_p5 = scmp.lt.s32.totalorder %s234_s12, %s234_s12 }
  0x15   : > { %p1237_p11 = pnand %p933_p9, %p1478_p1  ;;  %p1025_p13 = scmp.ne.s32.totalorder %s234_s12, %s1024_s17 }
  0x16   : > { %p1033_p7 = scmp.lt.s32.totalorder %s1024_s17, %s1024_s17 }
  0x17   : > { %p1015_p12 = pneg %p1237_p11 }
  0x18   : > { %p1034_p10 = por %p1033_p7, %p1032_p5 }
  0x19   : > { %p1027_p0 = pnand %p1025_p13, %p1015_p12 }
  0x1b   : > { %p1028_p3 = pneg %p1027_p0 }
  0x1d   : > { %p1035_p2 = pnand %p1034_p10, %p1028_p3 }
  0x1f   : > { %1038 = shalt.err (!%p1035_p2)
}
  0x20   : > { %s1479_s18 = smov 256   ;;  %s1480_s19 = smov 16  }
  0x21   : > { %936 = dma.hbm_to_vmem [thread:$0]  (!%p1237_p11), %s1475_s5, 16384, %s234_s12, [#allocation7], %s1479_s18, %s1479_s18, %s1480_s19  }
  0x22   : > { %p31_p2 = scmp.eq.s32.totalorder %s30_s16, 0  ;;  %p40_p9 = scmp.ne.s32.totalorder %s1131_s28, %s1127_s27 }
  0x23   : > { %p41_p10 = scmp.eq.s32.totalorder %s1135_s29, 0  ;;  %p946_p12 = scmp.lt.s32.totalorder %s1135_s29, 2 }
  0x24   : > { %s1262_s22 = scalar_select %p31_p2, %s1131_s28, %s33_s15  }
  0x25   : > { %p42_p13 = por %p41_p10, %p40_p9  ;;  %p1488_p0 = scmp.eq.s32.totalorder %s1209_s6, 1 }
  0x26   : > { %s250_s24 = sand.u32 1, %s1131_s28   ;;  %s923_s25 = sshll.u32 %s1135_s29, 10 }
  0x27   : > { %p1266_p3 = por %p1488_p0, %p40_p9  ;;  %s905_s30 = sshll.u32 %s250_s24, 6 }
  0x28   : > { %s1275_s17 = scalar_lea.hbm %s1470_s0, %s923_s25  ;;  %s254_s12 = scalar_lea.vmem [#allocation3], %s905_s30 }
  0x29   : > { %s1489_s23 = scalar_select %p1266_p3, 1, 0 }
  0x2a   : > { %s261_s15 = sshll.u32 %s254_s12, 4  ;;  %p1277_p11 = pnand %p946_p12, %p42_p13  ;;  %s1281_s15 = int_to_ptr.vmem [resolvable:$true] %s261_s15 }
  0x2b   : > { %s1283_s20 = scalar_lea.sflag [#allocation4], %s250_s24  ;;  %s1039_s21 = scalar_lea.hbm %s1275_s17, 1024 }
  0x2c   : > { %p1040_p5 = scmp.ne.s32.totalorder %s1275_s17, %s1039_s21  ;;  %p1041_p7 = pneg %p1277_p11 }
  0x2d   : > { %s1044_s30 = scalar_lea.hbm %s1470_s0, 2048  ;;  %p1045_p10 = scmp.lt.s32.totalorder %s1275_s17, %s1470_s0 }
  0x2e   : > { %p1042_p2 = pnand %p1041_p7, %p1040_p5  ;;  %p1046_p12 = scmp.lt.s32.totalorder %s1044_s30, %s1039_s21 }
  0x30   : > { %p1043_p9 = pneg %p1042_p2  ;;  %p1047_p13 = por %p1046_p12, %p1045_p10 }
  0x32   : > { %p1048_p0 = pnand %p1047_p13, %p1043_p9 }
  0x34   : > { %1051 = shalt.err (!%p1048_p0)
}
  0x35   : > { %s1052_s24 = scalar_lea.vmem %s1281_s15, 1024  ;;  %s1140_s18 = smov [#allocation3]  }
  0x36   : > { %p1053_p1 = scmp.ne.s32.totalorder %s1281_s15, %s1052_s24  ;;  %s1057_s19 = sshll.u32 %s1140_s18, 4  ;;  %s1058_s19 = int_to_ptr.vmem [resolvable:$false] %s1057_s19 }
  0x37   : > { %s1059_s25 = scalar_lea.vmem %s1058_s19, 2048  ;;  %p1060_p2 = scmp.lt.s32.totalorder %s1281_s15, %s1058_s19 }
  0x38   : > { %p1055_p6 = pnand %p1053_p1, %p1041_p7  ;;  %p1061_p3 = scmp.lt.s32.totalorder %s1059_s25, %s1052_s24 }
  0x3a   : > { %p1056_p5 = pneg %p1055_p6  ;;  %p1062_p4 = por %p1061_p3, %p1060_p2 }
  0x3c   : > { %p1063_p8 = pnand %p1062_p4, %p1056_p5 }
  0x3e   : > { %1066 = shalt.err (!%p1063_p8)
}
  0x3f   : > { %s1491_s21 = smov 16   ;;  %s1492_s11 = smov 256  }
  0x40   : > { %940 = dma.hbm_to_vmem [thread:$0]  (!%p1277_p11), %s1275_s17, 1024, %s1281_s15, %s1283_s20, %s1492_s11, %s1492_s11, %s1491_s21  }
  0x41   : > { %p1493_p1 = scmp.ne.s32.totalorder %s1486_s10, 0 }
  0x42   : > { %s1310_s18 = sand.u32 (!%p1493_p1), 1, %s1127_s27   ;;  %p1494_p4 = scmp.ne.s32.totalorder (!%p1493_p1), %s1484_s8, 0 }
  0x43   : > { %273 = sbr.rel (%p1493_p1) target bundleno = 580 (0x244), region = 48  ;;  %s909_s19 = sshll.u32 (!%p1493_p1), %s1310_s18, 6 }
  0x44   : > { %s276_s30 = scalar_lea.sflag (!%p1493_p1), [#allocation4], %s1310_s18  ;;  %s279_s16 = scalar_lea.vmem (!%p1493_p1), [#allocation3], %s909_s19 }
  0x48   : > { %1110 = dma.done.wait (%p1494_p4), %s276_s30, 1024  }
  0x49   : > { %1112 = vsyncadd (%p1494_p4), %s276_s30, 4294966272  ;;  %p1495_p6 = scmp.eq.s32.totalorder %s1209_s6, 0 }
  0x4b   : > { %1114 = dma.done.wait (%p1495_p6), [#allocation7], 16384   ;;  %p1496_p8 = pmov %p1495_p6 }
  0x4c   : > { %v314_v1 = vld [vmem:[%s279_s16] sm:$0xff]  ;;  %v1324_v2 = vld [vmem:[%s279_s16 + $0x8] sm:$0xff]  ;;  %v316_v7 = vld [vmem:[%s279_s16 + $0x10] sm:$0xff]  ;;  %vm347_vm0 = vcmask 15360   ;;  %s313_s8 = scalar_lea.vmem [#allocation8], %s909_s19  ;;  %s924_s17 = sshll.u32 %s1209_s6, 10 }
  0x4d   : > { %1116 = vsyncadd (%p1496_p8), [#allocation7], 4294950912  ;;  %v318_v3 = vld [vmem:[%s279_s16 + $0x20] sm:$0xff]  ;;  %v322_v4 = vadd.f32 %v1324_v2, %v314_v1  ;;  %v1327_v5 = vld [vmem:[%s279_s16 + $0x28] sm:$0xff]  ;;  %v424_v11 = vadd.f32 %v316_v7, %v314_v1  ;;  %s818_s10 = sshll.u32 %s313_s8, 4  ;;  %s1427_s20 = scalar_lea.hbm %s1477_s7, %s924_s17  ;;  %s1422_s10 = int_to_ptr.vmem [resolvable:$true] %s818_s10 }
  0x4e   : > { %v445_v6 = vmax.f32 %v314_v1, %v318_v3  ;;  %v1329_v8 = vld [vmem:[%s279_s16 + $0x18] sm:$0xff]  ;;  %v328_v9 = vadd.f32 %v1327_v5, %v318_v3  ;;  %v454_v10 = vmax.f32 %v1324_v2, %v1327_v5  ;;  %v320_v12 = vld [vmem:[%s279_s16 + $0x30] sm:$0xff]  ;;  %v557_v28 = vld [vmem:[#allocation6 + $0x2e8] sm:$0xff]  ;;  %s805_s13 = scalar_lea.sflag [#allocation5], %s1310_s18  ;;  %s1067_s12 = scalar_lea.vmem %s1422_s10, 1024 }
  0x4f   : > { %v1334_v13 = vld [vmem:[%s279_s16 + $0x38] sm:$0xff]  ;;  %323 = vadd.xlane.f32.xlu0 %v322_v4  ;;  %v325_v14 = vadd.f32 %v1329_v8, %v316_v7  ;;  %v433_v15 = vadd.f32 %v1329_v8, %v1324_v2  ;;  %v446_v16 = vmax.f32 %v316_v7, %v320_v12  ;;  %v425_v18 = vadd.f32 %v424_v11, %v318_v3  ;;  %v558_v26 = vld [vmem:[#allocation6 + $0x2f0] sm:$0xff]  ;;  %v492_v29 = vld [vmem:[#allocation6 + $0xe8] sm:$0xff]  ;;  %p1068_p3 = scmp.ne.s32.totalorder %s1422_s10, %s1067_s12  ;;  %p1497_p11 = scmp.ne.s32.totalorder %s1489_s23, 0 }
  0x50   : > { %v455_v17 = vmax.f32 %v1329_v8, %v1334_v13  ;;  %329 = vadd.xlane.f32.xlu1 %v328_v9  ;;  %v331_v19 = vadd.f32 %v1334_v13, %v320_v12  ;;  %v559_v24 = vld [vmem:[#allocation6 + $0x2f8] sm:$0xff]  ;;  %v493_v27 = vld [vmem:[#allocation6 + $0xf0] sm:$0xff]  ;;  %v556_v30 = vld [vmem:[#allocation6 + $0x2e0] sm:$0xff]  ;;  %s1142_s6 = smov [#allocation8]  }
  0x51   : > { %v434_v20 = vadd.f32 %v433_v15, %v1327_v5  ;;  %v1343_v21 = vmax.f32 %v445_v6, %v446_v16  ;;  %v1345_v22 = vadd.f32 %v425_v18, %v320_v12  ;;  %v494_v25 = vld [vmem:[#allocation6 + $0xf8] sm:$0xff]  ;;  %592 = vmatprep.subr.mxu0 %v559_v24  ;;  %v491_v31 = vld [vmem:[#allocation6 + $0xe0] sm:$0xff]  ;;  %v554_v34 = vld [vmem:[#allocation6 + $0x2d0] sm:$0xff]  ;;  %p1069_p7 = pnand %p1068_p3, %p1497_p11  ;;  %s1071_s24 = sshll.u32 %s1142_s6, 4  ;;  %s1072_s24 = int_to_ptr.vmem [resolvable:$false] %s1071_s24 }
  0x52   : > { %663 = vmatprep.subr.mxu1 %v494_v25  ;;  %593 = vmatpush1.msra.mxu0 %v558_v26  ;;  %v555_v32 = vld [vmem:[#allocation6 + $0x2d8] sm:$0xff]  ;;  %v489_v35 = vld [vmem:[#allocation6 + $0xd0] sm:$0xff]  ;;  %v553_v36 = vld [vmem:[#allocation6 + $0x2c8] sm:$0xff]  ;;  %s1073_s25 = scalar_lea.vmem %s1072_s24, 2048  ;;  %p1074_p10 = scmp.lt.s32.totalorder %s1422_s10, %s1072_s24 }
  0x53   : > { %326 = vadd.xlane.f32.xlu0 %v325_v14  ;;  %v1348_v23 = vadd.f32 %v434_v20, %v1334_v13  ;;  %664 = vmatpush1.msra.mxu1 %v493_v27  ;;  %v490_v33 = vld [vmem:[#allocation6 + $0xd8] sm:$0xff]  ;;  %v488_v37 = vld [vmem:[#allocation6 + $0xc8] sm:$0xff]  ;;  %v552_v38 = vld [vmem:[#allocation6 + $0x2c0] sm:$0xff]  ;;  %p1070_p9 = pneg %p1069_p7  ;;  %p1075_p12 = scmp.lt.s32.totalorder %s1073_s25, %s1067_s12 }
  0x54   : > { %332 = vadd.xlane.f32.xlu1 %v331_v19  ;;  %594 = vmatprep.subr.mxu0 %v557_v28  ;;  %v487_v39 = vld [vmem:[#allocation6 + $0xc0] sm:$0xff]  ;;  %v551_v40 = vld [vmem:[#allocation6 + $0x2b8] sm:$0xff]  ;;  %v550_v42 = vld [vmem:[#allocation6 + $0x2b0] sm:$0xff]  ;;  %v1356_v28 = vmax.f32 %v454_v10, %v455_v17 }
  0x55   : > { %665 = vmatprep.subr.mxu1 %v492_v29  ;;  %595 = vmatpush1.msra.mxu0 %v556_v30  ;;  %v486_v41 = vld [vmem:[#allocation6 + $0xb8] sm:$0xff]  ;;  %v485_v43 = vld [vmem:[#allocation6 + $0xb0] sm:$0xff]  ;;  %v549_v44 = vld [vmem:[#allocation6 + $0x2a8] sm:$0xff]  ;;  %p1076_p13 = por %p1075_p12, %p1074_p10 }
  0x56   : > { %666 = vmatpush1.msra.mxu1 %v491_v31  ;;  %596 = vmatprep.subr.mxu0 %v555_v32  ;;  %v484_v45 = vld [vmem:[#allocation6 + $0xa8] sm:$0xff]  ;;  %v548_v46 = vld [vmem:[#allocation6 + $0x2a0] sm:$0xff]  ;;  %v547_v48 = vld [vmem:[#allocation6 + $0x298] sm:$0xff] }
  0x57   : > { %667 = vmatprep.subr.mxu1 %v490_v33  ;;  %597 = vmatpush1.msra.mxu0 %v554_v34  ;;  %v483_v47 = vld [vmem:[#allocation6 + $0xa0] sm:$0xff]  ;;  %v482_v49 = vld [vmem:[#allocation6 + $0x98] sm:$0xff]  ;;  %v546_v50 = vld [vmem:[#allocation6 + $0x290] sm:$0xff]  ;;  %p1077_p0 = pnand %p1076_p13, %p1070_p9 }
  0x58   : > { %668 = vmatpush1.msra.mxu1 %v489_v35  ;;  %598 = vmatprep.subr.mxu0 %v553_v36  ;;  %v481_v51 = vld [vmem:[#allocation6 + $0x90] sm:$0xff]  ;;  %v545_v52 = vld [vmem:[#allocation6 + $0x288] sm:$0xff]  ;;  %v544_v54 = vld [vmem:[#allocation6 + $0x280] sm:$0xff] }
  0x59   : > { %669 = vmatprep.subr.mxu1 %v488_v37  ;;  %599 = vmatpush1.msra.mxu0 %v552_v38  ;;  %v480_v53 = vld [vmem:[#allocation6 + $0x88] sm:$0xff]  ;;  %v479_v55 = vld [vmem:[#allocation6 + $0x80] sm:$0xff]  ;;  %v543_v56 = vld [vmem:[#allocation6 + $0x278] sm:$0xff] }
  0x5a   : > { %670 = vmatpush1.msra.mxu1 %v487_v39  ;;  %600 = vmatprep.subr.mxu0 %v551_v40  ;;  %v478_v57 = vld [vmem:[#allocation6 + $0x78] sm:$0xff]  ;;  %v542_v58 = vld [vmem:[#allocation6 + $0x270] sm:$0xff]  ;;  %v541_v60 = vld [vmem:[#allocation6 + $0x268] sm:$0xff] }
  0x5b   : > { %671 = vmatprep.subr.mxu1 %v486_v41  ;;  %601 = vmatpush1.msra.mxu0 %v550_v42  ;;  %v477_v59 = vld [vmem:[#allocation6 + $0x70] sm:$0xff]  ;;  %v476_v61 = vld [vmem:[#allocation6 + $0x68] sm:$0xff]  ;;  %v540_v62 = vld [vmem:[#allocation6 + $0x260] sm:$0xff] }
  0x5c   : > { %672 = vmatpush1.msra.mxu1 %v485_v43  ;;  %602 = vmatprep.subr.mxu0 %v549_v44  ;;  %v475_v63 = vld [vmem:[#allocation6 + $0x60] sm:$0xff]  ;;  %v539_v0 = vld [vmem:[#allocation6 + $0x258] sm:$0xff]  ;;  %v538_v3 = vld [vmem:[#allocation6 + $0x250] sm:$0xff]  ;;  %v436_v44 = vrot.slane %v1348_v23, 4 }
  0x5d   : > { %673 = vmatprep.subr.mxu1 %v484_v45  ;;  %603 = vmatpush1.msra.mxu0 %v548_v46  ;;  %v474_v1 = vld [vmem:[#allocation6 + $0x58] sm:$0xff]  ;;  %v473_v4 = vld [vmem:[#allocation6 + $0x50] sm:$0xff]  ;;  %v537_v6 = vld [vmem:[#allocation6 + $0x248] sm:$0xff]  ;;  %v427_v45 = vrot.slane %v1345_v22, 4 }
  0x5e   : > { %674 = vmatpush1.msra.mxu1 %v483_v47  ;;  %604 = vmatprep.subr.mxu0 %v547_v48  ;;  %v472_v7 = vld [vmem:[#allocation6 + $0x48] sm:$0xff]  ;;  %v536_v9 = vld [vmem:[#allocation6 + $0x240] sm:$0xff]  ;;  %v535_v12 = vld [vmem:[#allocation6 + $0x238] sm:$0xff] }
  0x5f   : > { %675 = vmatprep.subr.mxu1 %v482_v49  ;;  %605 = vmatpush1.msra.mxu0 %v546_v50  ;;  %v471_v11 = vld [vmem:[#allocation6 + $0x40] sm:$0xff]  ;;  %v470_v14 = vld [vmem:[#allocation6 + $0x38] sm:$0xff]  ;;  %v534_v15 = vld [vmem:[#allocation6 + $0x230] sm:$0xff] }
  0x60   : > { %676 = vmatpush1.msra.mxu1 %v481_v51  ;;  %606 = vmatprep.subr.mxu0 %v545_v52  ;;  %v469_v16 = vld [vmem:[#allocation6 + $0x30] sm:$0xff]  ;;  %v533_v18 = vld [vmem:[#allocation6 + $0x228] sm:$0xff]  ;;  %v532_v20 = vld [vmem:[#allocation6 + $0x220] sm:$0xff]  ;;  %v457_v52 = vrot.slane %v1356_v28, 4 }
  0x61   : > { %677 = vmatprep.subr.mxu1 %v480_v53  ;;  %607 = vmatpush1.msra.mxu0 %v544_v54  ;;  %v468_v19 = vld [vmem:[#allocation6 + $0x28] sm:$0xff]  ;;  %v467_v24 = vld [vmem:[#allocation6 + $0x20] sm:$0xff]  ;;  %v531_v25 = vld [vmem:[#allocation6 + $0x218] sm:$0xff] }
  0x62   : > { %678 = vmatpush1.msra.mxu1 %v479_v55  ;;  %608 = vmatprep.subr.mxu0 %v543_v56  ;;  %v466_v26 = vld [vmem:[#allocation6 + $0x18] sm:$0xff]  ;;  %v530_v27 = vld [vmem:[#allocation6 + $0x210] sm:$0xff]  ;;  %v529_v30 = vld [vmem:[#allocation6 + $0x208] sm:$0xff]  ;;  %v437_v55 = vadd.f32 %v436_v44, %v1348_v23  ;;  %v428_v56 = vadd.f32 %v427_v45, %v1345_v22 }
  0x63   : > { %679 = vmatprep.subr.mxu1 %v478_v57  ;;  %609 = vmatpush1.msra.mxu0 %v542_v58  ;;  %v465_v29 = vld [vmem:[#allocation6 + $0x10] sm:$0xff]  ;;  %v464_v31 = vld [vmem:[#allocation6 + $0x8] sm:$0xff]  ;;  %v528_v32 = vld [vmem:[#allocation6 + $0x200] sm:$0xff] }
  0x64   : > { %680 = vmatpush1.msra.mxu1 %v477_v59  ;;  %610 = vmatprep.subr.mxu0 %v541_v60  ;;  %v463_v33 = vld [vmem:[#allocation6] sm:$0xff]  ;;  %v591_v34 = vld [vmem:[#allocation6 + $0x3f8] sm:$0xff]  ;;  %v590_v36 = vld [vmem:[#allocation6 + $0x3f0] sm:$0xff]  ;;  %v448_v59 = vrot.slane %v1343_v21, 4 }
  0x65   : > { %681 = vmatprep.subr.mxu1 %v476_v61  ;;  %611 = vmatpush1.msra.mxu0 %v540_v62  ;;  %v526_v35 = vld [vmem:[#allocation6 + $0x1f8] sm:$0xff]  ;;  %v525_v8 = vld [vmem:[#allocation6 + $0x1f0] sm:$0xff]  ;;  %v589_v2 = vld [vmem:[#allocation6 + $0x3e8] sm:$0xff] }
  0x66   : > { %682 = vmatpush1.msra.mxu1 %v475_v63  ;;  %612 = vmatprep.subr.mxu0 %v539_v0  ;;  %v524_v5 = vld [vmem:[#allocation6 + $0x1e8] sm:$0xff]  ;;  %v588_v10 = vld [vmem:[#allocation6 + $0x3e0] sm:$0xff]  ;;  %v587_v17 = vld [vmem:[#allocation6 + $0x3d8] sm:$0xff]  ;;  %v458_v0 = vmax.f32 %v1356_v28, %v457_v52 }
  0x67   : > { %683 = vmatprep.subr.mxu1 %v474_v1  ;;  %613 = vmatpush1.msra.mxu0 %v538_v3  ;;  %v523_v13 = vld [vmem:[#allocation6 + $0x1e0] sm:$0xff]  ;;  %v522_v37 = vld [vmem:[#allocation6 + $0x1d8] sm:$0xff]  ;;  %v586_v38 = vld [vmem:[#allocation6 + $0x3d0] sm:$0xff]  ;;  %v438_v1 = vrot.slane %v437_v55, 2 }
  0x68   : > { %684 = vmatpush1.msra.mxu1 %v473_v4  ;;  %614 = vmatprep.subr.mxu0 %v537_v6  ;;  %v521_v39 = vld [vmem:[#allocation6 + $0x1d0] sm:$0xff]  ;;  %v585_v40 = vld [vmem:[#allocation6 + $0x3c8] sm:$0xff]  ;;  %v584_v42 = vld [vmem:[#allocation6 + $0x3c0] sm:$0xff]  ;;  %v449_v6 = vmax.f32 %v1343_v21, %v448_v59 }
  0x69   : > { %685 = vmatprep.subr.mxu1 %v472_v7  ;;  %615 = vmatpush1.msra.mxu0 %v536_v9  ;;  %v520_v41 = vld [vmem:[#allocation6 + $0x1c8] sm:$0xff]  ;;  %v519_v43 = vld [vmem:[#allocation6 + $0x1c0] sm:$0xff]  ;;  %v583_v46 = vld [vmem:[#allocation6 + $0x3b8] sm:$0xff]  ;;  %v429_v7 = vrot.slane %v428_v56, 2 }
  0x6a   : > { %686 = vmatpush1.msra.mxu1 %v471_v11  ;;  %616 = vmatprep.subr.mxu0 %v535_v12  ;;  %v518_v47 = vld [vmem:[#allocation6 + $0x1b8] sm:$0xff]  ;;  %v582_v48 = vld [vmem:[#allocation6 + $0x3b0] sm:$0xff]  ;;  %v581_v50 = vld [vmem:[#allocation6 + $0x3a8] sm:$0xff]  ;;  %v450_v21 = vrot.slane %v449_v6, 2 }
  0x6b   : > { %687 = vmatprep.subr.mxu1 %v470_v14  ;;  %617 = vmatpush1.msra.mxu0 %v534_v15  ;;  %v517_v49 = vld [vmem:[#allocation6 + $0x1b0] sm:$0xff]  ;;  %v516_v51 = vld [vmem:[#allocation6 + $0x1a8] sm:$0xff]  ;;  %v580_v53 = vld [vmem:[#allocation6 + $0x3a0] sm:$0xff]  ;;  %v459_v15 = vrot.slane %v458_v0, 2 }
  0x6c   : > { %688 = vmatpush1.msra.mxu1 %v469_v16  ;;  %618 = vmatprep.subr.mxu0 %v533_v18  ;;  %v515_v54 = vld [vmem:[#allocation6 + $0x1a0] sm:$0xff]  ;;  %v579_v57 = vld [vmem:[#allocation6 + $0x398] sm:$0xff]  ;;  %v578_v60 = vld [vmem:[#allocation6 + $0x390] sm:$0xff] }
  0x6d   : > { %689 = vmatprep.subr.mxu1 %v468_v19  ;;  %619 = vmatpush1.msra.mxu0 %v532_v20  ;;  %v514_v58 = vld [vmem:[#allocation6 + $0x198] sm:$0xff]  ;;  %v513_v61 = vld [vmem:[#allocation6 + $0x190] sm:$0xff]  ;;  %v577_v62 = vld [vmem:[#allocation6 + $0x388] sm:$0xff]  ;;  %v439_v19 = vadd.f32 %v438_v1, %v437_v55 }
  0x6e   : > { %690 = vmatpush1.msra.mxu1 %v467_v24  ;;  %620 = vmatprep.subr.mxu0 %v531_v25  ;;  %v512_v63 = vld [vmem:[#allocation6 + $0x188] sm:$0xff]  ;;  %v576_v23 = vld [vmem:[#allocation6 + $0x380] sm:$0xff]  ;;  %v575_v3 = vld [vmem:[#allocation6 + $0x378] sm:$0xff]  ;;  %v430_v25 = vadd.f32 %v429_v7, %v428_v56 }
  0x6f   : > { %691 = vmatprep.subr.mxu1 %v466_v26  ;;  %621 = vmatpush1.msra.mxu0 %v530_v27  ;;  %v511_v22 = vld [vmem:[#allocation6 + $0x180] sm:$0xff]  ;;  %v510_v4 = vld [vmem:[#allocation6 + $0x178] sm:$0xff]  ;;  %v574_v9 = vld [vmem:[#allocation6 + $0x370] sm:$0xff] }
  0x70   : > { %692 = vmatpush1.msra.mxu1 %v465_v29  ;;  %622 = vmatprep.subr.mxu0 %v529_v30  ;;  %v509_v11 = vld [vmem:[#allocation6 + $0x170] sm:$0xff]  ;;  %v573_v12 = vld [vmem:[#allocation6 + $0x368] sm:$0xff]  ;;  %v572_v16 = vld [vmem:[#allocation6 + $0x360] sm:$0xff]  ;;  %v460_v30 = vmax.f32 %v458_v0, %v459_v15 }
  0x71   : > { %693 = vmatprep.subr.mxu1 %v464_v31  ;;  %623 = vmatpush1.msra.mxu0 %v528_v32  ;;  %v508_v14 = vld [vmem:[#allocation6 + $0x168] sm:$0xff]  ;;  %v507_v18 = vld [vmem:[#allocation6 + $0x160] sm:$0xff]  ;;  %v571_v20 = vld [vmem:[#allocation6 + $0x358] sm:$0xff] }
  0x72   : > { %694 = vmatpush1.msra.mxu1 %v463_v33  ;;  %624 = vmatprep.subr.mxu0 %v591_v34  ;;  %v506_v24 = vld [vmem:[#allocation6 + $0x158] sm:$0xff]  ;;  %v570_v26 = vld [vmem:[#allocation6 + $0x350] sm:$0xff]  ;;  %v569_v28 = vld [vmem:[#allocation6 + $0x348] sm:$0xff]  ;;  %v440_v33 = vrot.slane %v439_v19, 1 }
  0x73   : > { %695 = vmatprep.subr.mxu1 %v526_v35  ;;  %625 = vmatpush2.msra.mxu0 %v590_v36  ;;  %v505_v27 = vld [vmem:[#allocation6 + $0x150] sm:$0xff]  ;;  %v504_v29 = vld [vmem:[#allocation6 + $0x148] sm:$0xff]  ;;  %v568_v31 = vld [vmem:[#allocation6 + $0x340] sm:$0xff]  ;;  %v451_v36 = vmax.f32 %v449_v6, %v450_v21 }
  0x74   : > { %696 = vmatpush2.msra.mxu1 %v525_v8  ;;  %626 = vmatprep.subr.mxu0 %v589_v2  ;;  %v503_v32 = vld [vmem:[#allocation6 + $0x140] sm:$0xff]  ;;  %v567_v34 = vld [vmem:[#allocation6 + $0x338] sm:$0xff]  ;;  %v431_v8 = vrot.slane %v430_v25, 1  ;;  %v566_v2 = vld [vmem:[#allocation6 + $0x330] sm:$0xff] }
  0x75   : > { %697 = vmatprep.subr.mxu1 %v524_v5  ;;  %627 = vmatpush2.msra.mxu0 %v588_v10  ;;  %v502_v35 = vld [vmem:[#allocation6 + $0x138] sm:$0xff]  ;;  %v501_v5 = vld [vmem:[#allocation6 + $0x130] sm:$0xff]  ;;  %v565_v10 = vld [vmem:[#allocation6 + $0x328] sm:$0xff] }
  0x76   : > { %698 = vmatpush2.msra.mxu1 %v523_v13  ;;  %628 = vmatprep.subr.mxu0 %v587_v17  ;;  %v500_v13 = vld [vmem:[#allocation6 + $0x128] sm:$0xff]  ;;  %v461_v17 = vrot.slane %v460_v30, 1  ;;  %v562_v44 = vld [vmem:[#allocation6 + $0x310] sm:$0xff] }
  0x77   : > { %699 = vmatprep.subr.mxu1 %v522_v37  ;;  %629 = vmatpush2.msra.mxu0 %v586_v38  ;;  %v564_v37 = vld [vmem:[#allocation6 + $0x320] sm:$0xff]  ;;  %v497_v45 = vld [vmem:[#allocation6 + $0x110] sm:$0xff] }
  0x78   : > { %700 = vmatpush2.msra.mxu1 %v521_v39  ;;  %630 = vmatprep.subr.mxu0 %v585_v40  ;;  %v499_v38 = vld [vmem:[#allocation6 + $0x120] sm:$0xff]  ;;  %v441_v39 = vadd.f32 %v440_v33, %v439_v19  ;;  %v563_v40 = vld [vmem:[#allocation6 + $0x318] sm:$0xff] }
  0x79   : > { %701 = vmatprep.subr.mxu1 %v520_v41  ;;  %631 = vmatpush2.msra.mxu0 %v584_v42  ;;  %v498_v41 = vld [vmem:[#allocation6 + $0x118] sm:$0xff]  ;;  %v452_v42 = vrot.slane %v451_v36, 1 }
  0x7a   : > { %702 = vmatpush2.msra.mxu1 %v519_v43  ;;  %632 = vmatprep.subr.mxu0 %v583_v46  ;;  %v432_v43 = vadd.f32 %v431_v8, %v430_v25  ;;  %v561_v46 = vld [vmem:[#allocation6 + $0x308] sm:$0xff]  ;;  %v364_v33 = vld [vmem:[%s1473_s3] sm:$0xff] }
  0x7b   : > { %703 = vmatprep.subr.mxu1 %v518_v47  ;;  %633 = vmatpush2.msra.mxu0 %v582_v48  ;;  %v496_v47 = vld [vmem:[#allocation6 + $0x108] sm:$0xff]  ;;  %v462_v48 = vmax.f32 %v460_v30, %v461_v17  ;;  %v453_v52 = vmax.f32 %v451_v36, %v452_v42 }
  0x7c   : > { %704 = vmatpush2.msra.mxu1 %v517_v49  ;;  %634 = vmatprep.subr.mxu0 %v581_v50  ;;  %v560_v49 = vld [vmem:[#allocation6 + $0x300] sm:$0xff]  ;;  %v444_v50 = vmul.f32 0.03125, %v441_v39  ;;  %v366_v36 = vld [vmem:[%s1473_s3 + $0x10] sm:$0xff]  ;;  %v734_v39 = vld [vmem:[#allocation2] sm:$0x1] }
  0x7d   : > { %705 = vmatprep.subr.mxu1 %v516_v51  ;;  %635 = vmatpush2.msra.mxu0 %v580_v53  ;;  %v495_v51 = vld [vmem:[#allocation6 + $0x100] sm:$0xff]  ;;  %v443_v53 = vmul.f32 0.03125, %v432_v43 }
  0x7e   : > { %706 = vmatpush2.msra.mxu1 %v515_v54  ;;  %636 = vmatprep.subr.mxu0 %v579_v57  ;;  %v1141_v54 = vmov 0  }
  0x7f   : > { %707 = vmatprep.subr.mxu1 %v514_v58  ;;  %637 = vmatpush2.msra.mxu0 %v578_v60  ;;  %v339_v58 = vld [vmem:[%s1471_s1] sm:$0xff]  ;;  %v341_v60 = vld [vmem:[%s1471_s1 + $0x10] sm:$0xff] }
  0x80   : > { %708 = vmatpush2.msra.mxu1 %v513_v61  ;;  %638 = vmatprep.subr.mxu0 %v577_v62  ;;  %v340_v61 = vld [vmem:[%s1471_s1 + $0x8] sm:$0xff] }
  0x81   : > { %709 = vmatprep.subr.mxu1 %v512_v63  ;;  %639 = vmatpush2.msra.mxu0 %v576_v23  ;;  %v342_v23 = vld [vmem:[%s1471_s1 + $0x18] sm:$0xff] }
  0x82   : > { %710 = vmatpush2.msra.mxu1 %v511_v22  ;;  %640 = vmatprep.subr.mxu0 %v575_v3 }
  0x83   : > { %711 = vmatprep.subr.mxu1 %v510_v4  ;;  %641 = vmatpush2.msra.mxu0 %v574_v9 }
  0x84   : > { %712 = vmatpush2.msra.mxu1 %v509_v11  ;;  %642 = vmatprep.subr.mxu0 %v573_v12 }
  0x85   : > { %713 = vmatprep.subr.mxu1 %v508_v14  ;;  %643 = vmatpush2.msra.mxu0 %v572_v16 }
  0x86   : > { %714 = vmatpush2.msra.mxu1 %v507_v18  ;;  %644 = vmatprep.subr.mxu0 %v571_v20 }
  0x87   : > { %715 = vmatprep.subr.mxu1 %v506_v24  ;;  %645 = vmatpush2.msra.mxu0 %v570_v26  ;;  %v368_v24 = vlaneseq }
  0x88   : > { %716 = vmatpush2.msra.mxu1 %v505_v27  ;;  %646 = vmatprep.subr.mxu0 %v569_v28  ;;  %v361_v27 = vld [vmem:[%s1472_s2] sm:$0x1] }
  0x89   : > { %717 = vmatprep.subr.mxu1 %v504_v29  ;;  %647 = vmatpush2.msra.mxu0 %v568_v31  ;;  %v369_v26 = vshrl.u32 %v368_v24, 7 }
  0x8a   : > { %718 = vmatpush2.msra.mxu1 %v503_v32  ;;  %648 = vmatprep.subr.mxu0 %v567_v34  ;;  %v365_v32 = vld [vmem:[%s1473_s3 + $0x8] sm:$0xff] }
  0x8b   : > { %719 = vmatprep.subr.mxu1 %v502_v35  ;;  %649 = vmatpush2.msra.mxu0 %v566_v2  ;;  %v1385_v30 = vsub.s32 0, %v369_v26  ;;  %v367_v35 = vld [vmem:[%s1473_s3 + $0x18] sm:$0xff] }
  0x8c   : > { %720 = vmatpush2.msra.mxu1 %v501_v5  ;;  %650 = vmatprep.subr.mxu0 %v565_v10 }
  0x8d   : > { %721 = vmatprep.subr.mxu1 %v500_v13  ;;  %651 = vmatpush2.msra.mxu0 %v564_v37 }
  0x8e   : > { %722 = vmatpush2.msra.mxu1 %v499_v38  ;;  %652 = vmatprep.subr.mxu0 %v563_v40  ;;  %v389_v40 = vld [vmem:[%s1474_s4 + $0x8] sm:$0xff] }
  0x8f   : > { %723 = vmatprep.subr.mxu1 %v498_v41  ;;  %653 = vmatpush2.msra.mxu0 %v562_v44  ;;  %v388_v41 = vld [vmem:[%s1474_s4] sm:$0xff] }
  0x90   : > { %724 = vmatpush2.msra.mxu1 %v497_v45  ;;  %654 = vmatprep.subr.mxu0 %v561_v46  ;;  %v391_v46 = vld [vmem:[%s1474_s4 + $0x18] sm:$0xff] }
  0x91   : > { %725 = vmatprep.subr.mxu1 %v496_v47  ;;  %655 = vmatpush2.msra.mxu0 %v560_v49  ;;  %v390_v47 = vld [vmem:[%s1474_s4 + $0x10] sm:$0xff] }
  0x92   : > { %656 = vmatprep.mubr.f32.mxu0 %v462_v48  ;;  %726 = vmatpush2.msra.mxu1 %v495_v51 }
  0x93   : > { %727 = vmatprep.mubr.f32.mxu1 %v444_v50  ;;  %657 = vmatmul.mubr.f32.vlgmr.msra.gmra.mxu0 %v453_v52 }
  0x94   : > { %728 = vmatmul.mubr.f32.vlgmr.msra.gmra.mxu1 %v443_v53  ;;  %987 = vset.pattern.permute.xlu0 %v1141_v54 }
  0x95   : > { %988 = vset.pattern.permute.xlu1 %v1141_v54 }
  0xd8   : > { %v324_v55 = vpop.xlane.xlu0 %323 }
  0xd9   : > { %v335_v56 = vmul.f32 0.00390625, %v324_v55  ;;  %v330_v57 = vpop.xlane.xlu1 %329 }
  0xda   : > { %v337_v59 = vmul.f32 0.00390625, %v330_v57 }
  0xdb   : > { %v343_v63 = vmul.f32 %v339_v58, %v335_v56 }
  0xdc   : > { %v327_v62 = vpop.xlane.xlu0 %326  ;;  %v345_v3 = vmul.f32 %v341_v60, %v337_v59 }
  0xdd   : > { %v336_v0 = vmul.f32 0.00390625, %v327_v62  ;;  %v333_v22 = vpop.xlane.xlu1 %332  ;;  %v348_v7 = vsel %vm347_vm0, %v343_v63, 0.0 }
  0xde   : > { %v338_v1 = vmul.f32 0.00390625, %v333_v22  ;;  %v351_v12 = vsel %vm347_vm0, %v345_v3, 0.0 }
  0xdf   : > { %v344_v4 = vmul.f32 %v340_v61, %v336_v0 }
  0xe0   : > { %v346_v6 = vmul.f32 %v342_v23, %v338_v1 }
  0xe1   : > { %v349_v9 = vsel %vm347_vm0, %v344_v4, 0.0 }
  0xe2   : > { %v350_v11 = vadd.f32 %v349_v9, %v348_v7  ;;  %v353_v14 = vsel %vm347_vm0, %v346_v6, 0.0 }
  0xe4   : > { %v352_v15 = vadd.f32 %v351_v12, %v350_v11 }
  0xe6   : > { %v354_v16 = vadd.f32 %v353_v14, %v352_v15 }
  0xe8   : > { %v355_v18 = vrot.slane %v354_v16, 4 }
  0xea   : > { %v356_v19 = vadd.f32 %v355_v18, %v354_v16 }
  0xec   : > { %v357_v20 = vrot.slane %v356_v19, 2 }
  0xee   : > { %v358_v21 = vadd.f32 %v357_v20, %v356_v19 }
  0xf0   : > { %v359_v25 = vrot.slane %v358_v21, 1 }
  0xf2   : > { %v360_v28 = vadd.f32 %v359_v25, %v358_v21 }
  0xf4   : > { %v362_v29 = vadd.f32 %v361_v27, %v360_v28 }
  0xf6   : > { %v363_v31 = vmax.f32 %v362_v29, 0.0 }
  0xf8   : > { %v371_v34 = vrot.slane %v363_v31, %v1385_v30 }
  0xfa   : > { %v373_v8 = vmul.f32 %v371_v34, %v365_v32  ;;  %v372_v2 = vmul.f32 %v371_v34, %v364_v33  ;;  %v375_v13 = vmul.f32 %v371_v34, %v367_v35  ;;  %v374_v17 = vmul.f32 %v371_v34, %v366_v36 }
  0xfc   : > { %v379_v5 = vsel %vm347_vm0, %v373_v8, 0.0  ;;  %v376_v10 = vsel %vm347_vm0, %v372_v2, 0.0  ;;  %v385_v37 = vsel %vm347_vm0, %v375_v13, 0.0  ;;  %v382_v38 = vsel %vm347_vm0, %v374_v17, 0.0 }
  0xfd   : > { %380 = vadd.xlane.f32.xlu1 %v379_v5  ;;  %377 = vadd.xlane.f32.xlu0 %v376_v10 }
 0x101   : > { %386 = vadd.xlane.f32.xlu1 %v385_v37  ;;  %383 = vadd.xlane.f32.xlu0 %v382_v38 }
 0x117   : > { %737 = vperm.xlu0 %987, %v734_v39  }
 0x153   : > { %v658_v9 = vpop.f32.mrf.mxu0 }
 0x154   : > { %v729_v11 = vpop.f32.mrf.mxu1 }
 0x155   : > { %v660_v14 = vpop.f32.mrf.mxu0  ;;  %v730_v16 = vadd.f32 %v729_v11, %v658_v9 }
 0x156   : > { %v731_v15 = vpop.f32.mrf.mxu1 }
 0x157   : > { %v732_v19 = vadd.f32 %v731_v15, %v660_v14 }
 0x186   : > { %v381_v42 = vpop.xlane.xlu1 %380  ;;  %v378_v43 = vpop.xlane.xlu0 %377 }
 0x187   : > { %v393_v44 = vadd.f32 %v389_v40, %v381_v42  ;;  %v392_v45 = vadd.f32 %v388_v41, %v378_v43 }
 0x189   : > { %v397_v48 = vadd.f32 %v393_v44, %v393_v44  ;;  %v396_v49 = vadd.f32 %v392_v45, %v392_v45 }
 0x18a   : > { %v387_v50 = vpop.xlane.xlu1 %386  ;;  %v384_v51 = vpop.xlane.xlu0 %383 }
 0x18b   : > { %v913_v52 = vmul.f32 -1.442695, %v397_v48  ;;  %v912_v53 = vmul.f32 -1.442695, %v396_v49  ;;  %v395_v54 = vadd.f32 %v391_v46, %v387_v50  ;;  %v394_v55 = vadd.f32 %v390_v47, %v384_v51 }
 0x18d   : > { %989 = vpow2.f32 %v913_v52  ;;  %v398_v56 = vadd.f32 %v394_v55, %v394_v55  ;;  %v399_v57 = vadd.f32 %v395_v54, %v395_v54 }
 0x18e   : > { %991 = vpow2.f32 %v912_v53 }
 0x18f   : > { %v914_v58 = vmul.f32 -1.442695, %v398_v56  ;;  %v915_v59 = vmul.f32 -1.442695, %v399_v57 }
 0x191   : > { %993 = vpow2.f32 %v914_v58 }
 0x192   : > { %995 = vpow2.f32 %v915_v59  ;;  %v738_v12 = vpop.permute.xlu0 %737 }
 0x193   : > { %v743_v18 = vrot.slane %v738_v12, %v1385_v30 }
 0x195   : > { %v744_v20 = vadd.f32 %v743_v18, %v730_v16  ;;  %v745_v24 = vadd.f32 %v743_v18, %v732_v19 }
 0x197   : > { %v916_v21 = vmul.f32 -1.442695, %v744_v20  ;;  %v917_v25 = vmul.f32 -1.442695, %v745_v24 }
 0x19a   : > { %v990_v60 = vpop.eup %989 }
 0x19b   : > { %v992_v61 = vpop.eup %991  ;;  %v413_v63 = vadd.f32 1.0, %v990_v60 }
 0x19c   : > { %v412_v62 = vadd.f32 1.0, %v992_v61 }
 0x19e   : > { %997 = vrcp.f32 %v412_v62  ;;  %v994_v0 = vpop.eup %993 }
 0x19f   : > { %999 = vrcp.f32 %v413_v63  ;;  %v414_v23 = vadd.f32 1.0, %v994_v0  ;;  %v996_v22 = vpop.eup %995 }
 0x1a0   : > { %v415_v1 = vadd.f32 1.0, %v996_v22 }
 0x1a1   : > { %1001 = vrcp.f32 %v414_v23 }
 0x1a2   : > { %1003 = vrcp.f32 %v415_v1 }
 0x1a3   : > { %1005 = vpow2.f32 %v916_v21 }
 0x1a4   : > { %1007 = vpow2.f32 %v917_v25 }
 0x1ab   : > { %v998_v3 = vpop.eup %997 }
 0x1ac   : > { %762 = vperm.xlu1 %988, %v998_v3   ;;  %v1000_v4 = vpop.eup %999 }
 0x1ae   : > { %v1002_v6 = vpop.eup %1001 }
 0x1af   : > { %v1004_v7 = vpop.eup %1003 }
 0x1b0   : > { %767 = vperm.xlu1 %988, %v1000_v4   ;;  %v1006_v26 = vpop.eup %1005 }
 0x1b1   : > { %v1008_v27 = vpop.eup %1007  ;;  %v752_v28 = vadd.f32 1.0, %v1006_v26 }
 0x1b2   : > { %v753_v29 = vadd.f32 1.0, %v1008_v27 }
 0x1b3   : > { %1009 = vrcp.f32 %v752_v28 }
 0x1b4   : > { %772 = vperm.xlu1 %988, %v1002_v6   ;;  %1011 = vrcp.f32 %v753_v29 }
 0x1b8   : > { %777 = vperm.xlu1 %988, %v1004_v7  }
 0x1c0   : > { %v1010_v31 = vpop.eup %1009 }
 0x1c1   : > { %v1012_v32 = vpop.eup %1011  ;;  %v758_v33 = vmul.f32 %v1010_v31, %v744_v20 }
 0x1c2   : > { %v759_v34 = vmul.f32 %v1012_v32, %v745_v24 }
 0x1c3   : > { %v783_v35 = vrot.slane %v758_v33, %v1385_v30 }
 0x1c4   : > { %v787_v36 = vrot.slane %v759_v34, %v1385_v30 }
 0x227   : > { %v763_v8 = vpop.permute.xlu1 %762 }
 0x228   : > { %v788_v2 = vadd.f32 %v783_v35, %v763_v8  ;;  %v789_v5 = vadd.f32 %v787_v36, %v763_v8 }
 0x22a   : > { %796 = vst [vmem:[%s313_s8] sm:$0xff] %v788_v2  ;;  %797 = vst [vmem:[%s313_s8 + $0x8] sm:$0xff] %v789_v5 }
 0x22b   : > { %v768_v10 = vpop.permute.xlu1 %767 }
 0x22c   : > { %v790_v13 = vadd.f32 %v783_v35, %v768_v10  ;;  %v791_v17 = vadd.f32 %v787_v36, %v768_v10 }
 0x22e   : > { %798 = vst [vmem:[%s313_s8 + $0x10] sm:$0xff] %v790_v13  ;;  %799 = vst [vmem:[%s313_s8 + $0x18] sm:$0xff] %v791_v17 }
 0x22f   : > { %v773_v37 = vpop.permute.xlu1 %772 }
 0x230   : > { %v792_v38 = vadd.f32 %v783_v35, %v773_v37  ;;  %v793_v39 = vadd.f32 %v787_v36, %v773_v37 }
 0x232   : > { %800 = vst [vmem:[%s313_s8 + $0x20] sm:$0xff] %v792_v38  ;;  %801 = vst [vmem:[%s313_s8 + $0x28] sm:$0xff] %v793_v39 }
 0x233   : > { %v778_v30 = vpop.permute.xlu1 %777 }
 0x234   : > { %v794_v40 = vadd.f32 %v783_v35, %v778_v30  ;;  %v795_v41 = vadd.f32 %v787_v36, %v778_v30 }
 0x236   : > { %802 = vst [vmem:[%s313_s8 + $0x30] sm:$0xff] %v794_v40  ;;  %803 = vst [vmem:[%s313_s8 + $0x38] sm:$0xff] %v795_v41 }
 0x237   : > { %1080 = shalt.err (!%p1077_p0)
}
 0x238   : > { %s1081_s21 = scalar_lea.hbm %s1427_s20, 1024  ;;  %s1085_s16 = scalar_lea.hbm %s1477_s7, 2048 }
 0x239   : > { %p1082_p5 = scmp.ne.s32.totalorder %s1427_s20, %s1081_s21  ;;  %p1086_p4 = scmp.lt.s32.totalorder %s1427_s20, %s1477_s7 }
 0x23a   : > { %p1087_p6 = scmp.lt.s32.totalorder %s1085_s16, %s1081_s21 }
 0x23b   : > { %p1083_p2 = pnand %p1082_p5, %p1497_p11 }
 0x23c   : > { %p1088_p8 = por %p1087_p6, %p1086_p4 }
 0x23d   : > { %p1084_p1 = pneg %p1083_p2 }
 0x23f   : > { %p1089_p3 = pnand %p1088_p8, %p1084_p1 }
 0x241   : > { %1092 = shalt.err (!%p1089_p3)
}
 0x242   : > { %s1143_s19 = smov 256   ;;  %s1144_s15 = smov 16  }
 0x243   : > { %931 = dma.vmem_to_hbm [thread:$0]  (%p1497_p11), %s1422_s10, 1024, %s1427_s20, %s805_s13, %s1143_s19, %s1143_s19, %s1144_s15  }
 0x244 PF: > { %s833_s12 = sand.u32 1, %s1123_s26   ;;  %p1498_p7 = scmp.ne.s32.totalorder %s1485_s9, 0 }
 0x245   : > { %p1499_p9 = scmp.ge.s32.totalorder %s1135_s29, 2  ;;  %s834_s6 = scalar_lea.sflag [#allocation5], %s833_s12 }
 0x247   : > { %p942_p10 = pnand %p1499_p9, %p1498_p7 }
 0x249   : > { %p943_p12 = pneg %p942_p10 }
 0x24b   : > { %1118 = dma.done.wait (%p943_p12), %s834_s6, 1024  }
 0x24c   : > { %1120 = vsyncadd (%p943_p12), %s834_s6, 4294966272  ;;  %p23_p13 = scmp.ge.s32.totalorder %s1242_s14, 4   ;;  %s1500_s26 = smov %s1127_s27 }
 0x24d   : > { %s1501_s27 = smov %s1131_s28  ;;  %s1502_s28 = smov %s1262_s22 }
 0x24e   : > { %s1503_s29 = smov %s1242_s14  ;;  %25 = sbr.rel (!%p23_p13) target bundleno = 9 (0x9), region = 98 }
 0x253   :  { %839 = vsyncpa [#allocation4], 1 }
 0x254   :  { %841 = vsyncpa [#allocation4 + $0x1], 1 }
 0x255   :  { %842 = vsyncpa [#allocation7], 1 }
 0x256   :  { %843 = vsyncpa [#allocation5], 1 }
 0x257   :  { %845 = vsyncpa [#allocation5 + $0x1], 1 }

</bundles_post_ra>
